<compile_context>
chip_gen: v5e
topology: v5e:2x2
jax: 0.10.0
libtpu: 0.0.40
codegen_flags: <defaults>
</compile_context>

<pallas_src>
import functools

import jax
import jax.numpy as jnp
from jax.experimental import pallas as pl
from jax.experimental.pallas import tpu as pltpu


def _round_up(x, m):
    return ((x + m - 1) // m) * m


# ----------------------------------------------------------------------------
# Kernel: one (query block i, support block k) step.
# For every CHUNK-row sub-chunk of the support tile:
#   d[m, q] = ||s_m||^2 - 2 <q_q, s_m>        (single MXU matmul, bias folded in)
#   chunk top-1 / top-2 over m (lowest index wins ties), merged into the
#   running (best1, best2, idx1, idx2) carried as (1, TQ) vreg values.
# At the last support block the running state is written out lane-dense.
# ----------------------------------------------------------------------------
def _match_kernel(q_ref, s_ref, d1_ref, d2_ref, i1_ref, i2_ref,
                  b1_ref, b2_ref, bi1_ref, bi2_ref, *, chunk, tm):
    k = pl.program_id(1)

    @pl.when(k == 0)
    def _init():
        b1_ref[...] = jnp.full_like(b1_ref, jnp.inf)
        b2_ref[...] = jnp.full_like(b2_ref, jnp.inf)
        bi1_ref[...] = jnp.zeros_like(bi1_ref)
        bi2_ref[...] = jnp.zeros_like(bi2_ref)

    q = q_ref[...]                     # (C_aug, TQ) bf16, k-invariant, loaded once
    tq = q.shape[1]
    # Chunk-local sublane iota: loop-invariant, hoisted out of the fori_loop.
    row = jax.lax.broadcasted_iota(jnp.int32, (chunk, tq), 0)
    n_chunks = tm // chunk
    tile_base = k * tm

    def chunk_body(c, carry):
        b1, b2, i1, i2 = carry
        start = pl.multiple_of(c * chunk, chunk)
        s_chunk = s_ref[pl.ds(start, chunk), :]            # (chunk, C_aug) bf16
        # d = ||s||^2 - 2<q,s> : same per-query ordering as ||q - s||^2.
        d = jax.lax.dot_general(
            s_chunk, q, (((1,), (0,)), ((), ())),
            preferred_element_type=jnp.float32)             # (chunk, TQ) f32

        # --- chunk top-1 (lowest row index wins exact ties) ---
        t1 = jnp.min(d, axis=0, keepdims=True)                               # (1, TQ)
        ti1 = jnp.min(jnp.where(d == t1, row, chunk), axis=0, keepdims=True)
        # Mask exactly the selected element (duplicates of a tied distance stay
        # eligible for the second slot, like torch.topk), then chunk top-2.
        dm = jnp.where(row == ti1, jnp.inf, d)
        t2 = jnp.min(dm, axis=0, keepdims=True)
        ti2 = jnp.min(jnp.where(dm == t2, row, chunk), axis=0, keepdims=True)

        base = tile_base + start
        gi1 = ti1 + base                                    # global support index
        gi2 = ti2 + base

        # --- merge chunk top-2 into the running top-2 (all (1, TQ), pure VPU);
        # strict '<' => earlier (lower global index) wins exact ties. ---
        take1 = t1 < b1
        nb1 = jnp.where(take1, t1, b1)
        ni1 = jnp.where(take1, gi1, i1)
        sec_a = jnp.minimum(b1, t2)                         # chunk took the top slot
        sec_ai = jnp.where(t2 < b1, gi2, i1)
        sec_b = jnp.minimum(b2, t1)                         # running kept the top slot
        sec_bi = jnp.where(t1 < b2, gi1, i2)
        nb2 = jnp.where(take1, sec_a, sec_b)
        ni2 = jnp.where(take1, sec_ai, sec_bi)
        return nb1, nb2, ni1, ni2

    carry = (b1_ref[...], b2_ref[...], bi1_ref[...], bi2_ref[...])
    carry = jax.lax.fori_loop(0, n_chunks, chunk_body, carry, unroll=2)
    b1_ref[...], b2_ref[...], bi1_ref[...], bi2_ref[...] = carry

    @pl.when(k == pl.num_programs(1) - 1)
    def _finalize():
        d1_ref[...] = b1_ref[...]
        d2_ref[...] = b2_ref[...]
        i1_ref[...] = bi1_ref[...]
        i2_ref[...] = bi2_ref[...]


def _ratio_weights_and_nn(q_feats, s_feats, eps, *, tq=256, tm=1024, chunk=64,
                          matmul_dtype=jnp.bfloat16):
    """Returns (Lowe-ratio weight (N,), nearest-neighbour support index (N,))."""
    n, c = q_feats.shape
    m, c2 = s_feats.shape
    assert c == c2, "feature dims must match"

    # --- query tiling: keep >=2 query blocks when possible so the 'parallel'
    # axis occupies both TensorCores on v7x (no effect on v5e/v6e). ---
    n_blocks128 = _round_up(n, 128) // 128
    tq = 128 * min(tq // 128, max(1, n_blocks128 // 2))
    n_pad = _round_up(n, tq)

    tm = min(tm, _round_up(m, 128))
    m_pad = _round_up(m, tm)
    assert tm % chunk == 0

    # Exact f32 ||s||^2: reused below to recover the top-2 dot products.
    s_sq = jnp.sum(s_feats.astype(jnp.float32) ** 2, axis=-1)       # (m,)

    # Pad support; padded rows get a huge bias so they are never selected.
    if m_pad != m:
        sf = jnp.pad(s_feats, ((0, m_pad - m), (0, 0)))
        s_sq_p = jnp.pad(s_sq, (0, m_pad - m), constant_values=1e30)
    else:
        sf, s_sq_p = s_feats, s_sq

    # Fold the ||s||^2 bias into the MXU contraction:
    #   s_aug = [s | ssq_hi | ssq_lo],  qT_aug = [-2 q^T ; 1 ; 1]
    #   => s_aug @ qT_aug = ||s||^2 - 2 <q, s>
    # ssq is split into two bf16 limbs to keep ~16 mantissa bits of the bias.
    ssq_hi = s_sq_p.astype(matmul_dtype)
    ssq_lo = (s_sq_p - ssq_hi.astype(jnp.float32)).astype(matmul_dtype)
    s_aug = jnp.concatenate(
        [sf.astype(matmul_dtype), ssq_hi[:, None], ssq_lo[:, None]], axis=-1)
    c_aug = c + 2

    # Pre-transposed queries (C_aug, N): the k-invariant q block needs no
    # in-kernel relayout for the (chunk, C_aug) @ (C_aug, TQ) matmul.
    qT_aug = jnp.concatenate(
        [(-2.0 * q_feats.astype(jnp.float32)).T.astype(matmul_dtype),
         jnp.ones((2, n), dtype=matmul_dtype)], axis=0)              # (c_aug, n)
    if n_pad != n:
        qT_aug = jnp.pad(qT_aug, ((0, 0), (0, n_pad - n)))

    gq = n_pad // tq
    gm = m_pad // tm

    kernel = functools.partial(_match_kernel, chunk=chunk, tm=tm)
    d1, d2, i1, i2 = pl.pallas_call(
        kernel,
        out_shape=(
            jax.ShapeDtypeStruct((gq, tq), jnp.float32),   # best distance
            jax.ShapeDtypeStruct((gq, tq), jnp.float32),   # 2nd best distance
            jax.ShapeDtypeStruct((gq, tq), jnp.int32),     # best support index
            jax.ShapeDtypeStruct((gq, tq), jnp.int32),     # 2nd best support index
        ),
        grid=(gq, gm),
        in_specs=[
            pl.BlockSpec((c_aug, tq), lambda i, k: (0, i)),   # queries (transposed)
            pl.BlockSpec((tm, c_aug), lambda i, k: (k, 0)),   # support tile
        ],
        out_specs=(
            pl.BlockSpec((1, tq), lambda i, k: (i, 0)),
            pl.BlockSpec((1, tq), lambda i, k: (i, 0)),
            pl.BlockSpec((1, tq), lambda i, k: (i, 0)),
            pl.BlockSpec((1, tq), lambda i, k: (i, 0)),
        ),
        scratch_shapes=[
            pltpu.VMEM((1, tq), jnp.float32),   # running best distance
            pltpu.VMEM((1, tq), jnp.float32),   # running 2nd best distance
            pltpu.VMEM((1, tq), jnp.int32),     # running best index
            pltpu.VMEM((1, tq), jnp.int32),     # running 2nd best index
        ],
        compiler_params=pltpu.CompilerParams(
            dimension_semantics=("parallel", "arbitrary"),
            vmem_limit_bytes=32 * 1024 * 1024),   # actual use is ~1-2 MiB; safe on v7x
    )(qT_aug, s_aug)

    d1 = d1.reshape(-1)[:n]
    d2 = d2.reshape(-1)[:n]
    i1 = i1.reshape(-1)[:n]
    i2 = i2.reshape(-1)[:n]

    # Recover the top-2 feature dot products from the ranking metric:
    #   d_j = ||s_j||^2 - 2 <q, s_j>  =>  <q, s_j> = (||s_j||^2 - d_j) / 2
    dot1 = 0.5 * (s_sq[i1] - d1)
    dot2 = 0.5 * (s_sq[i2] - d2)
    sim1 = 1.0 - dot1
    sim2 = 1.0 - dot2
    # Exact division (plain JAX, once per query). The max(sim2, 0) guard only
    # differs from the reference in the degenerate dot2 > 1 rounding case.
    weights = 1.0 - sim1 / (jnp.maximum(sim2, 0.0) + eps)
    return weights, i1


# ----------------------------------------------------------------------------
# Module-level forward (plain-JAX glue around the kernel).
# ----------------------------------------------------------------------------
def match_one_side(q_points, s_points, q_feats, s_feats,
                   num_correspondences, eps):
    weights, nn_idx = _ratio_weights_and_nn(q_feats, s_feats, eps)
    # top-k over N ratio weights + gathers: cheap glue, stays in JAX.
    corr_weights, q_corr_indices = jax.lax.top_k(weights, num_correspondences)
    s_corr_indices = nn_idx[q_corr_indices]
    q_corr_points = q_points[q_corr_indices]
    s_corr_points = s_points[s_corr_indices]
    q_corr_feats = q_feats[q_corr_indices]
    s_corr_feats = s_feats[s_corr_indices]
    return (q_corr_points, s_corr_points, q_corr_feats, s_corr_feats,
            corr_weights)


def correspondence_extractor_forward(src_points, tgt_points, src_feats,
                                     tgt_feats, num_correspondences,
                                     ratio_test=True, eps=1e-8):
    # NOTE: ratio_test flag kept for signature parity; the reference forward
    # always applies the ratio weighting regardless of the flag.
    sp1, tp1, sf1, tf1, w1 = match_one_side(
        src_points, tgt_points, src_feats, tgt_feats, num_correspondences, eps)
    tp2, sp2, tf2, sf2, w2 = match_one_side(
        tgt_points, src_points, tgt_feats, src_feats, num_correspondences, eps)
    src_corr_points = jnp.concatenate([sp1, sp2], axis=0)
    tgt_corr_points = jnp.concatenate([tp1, tp2], axis=0)
    src_corr_feats = jnp.concatenate([sf1, sf2], axis=0)
    tgt_corr_feats = jnp.concatenate([tf1, tf2], axis=0)
    corr_weights = jnp.concatenate([w1, w2], axis=0)
    return (src_corr_points, tgt_corr_points, src_corr_feats, tgt_corr_feats,
            corr_weights)


if __name__ == "__main__":
    key = jax.random.PRNGKey(0)
    k1, k2, k3, k4 = jax.random.split(key, 4)

    N, M, C = 64, 48, 32
    num_correspondences = 8

    src_points = jax.random.normal(k1, (N, 3), dtype=jnp.float32)
    tgt_points = jax.random.normal(k2, (M, 3), dtype=jnp.float32)
    src_feats = jax.random.normal(k3, (N, C), dtype=jnp.float32)
    tgt_feats = jax.random.normal(k4, (M, C), dtype=jnp.float32)
    # Unit-normalize features (matching-descriptor convention; makes 1 - dot a
    # proper cosine distance and keeps the ratio denominator positive).
    src_feats = src_feats / jnp.linalg.norm(src_feats, axis=-1, keepdims=True)
    tgt_feats = tgt_feats / jnp.linalg.norm(tgt_feats, axis=-1, keepdims=True)

    outs = correspondence_extractor_forward(
        src_points, tgt_points, src_feats, tgt_feats,
        num_correspondences=num_correspondences)
    outs = jax.block_until_ready(outs)

    sp, tp, sf, tf, w = outs
    assert sp.shape == (2 * num_correspondences, 3)
    assert tp.shape == (2 * num_correspondences, 3)
    assert sf.shape == (2 * num_correspondences, C)
    assert tf.shape == (2 * num_correspondences, C)
    assert w.shape == (2 * num_correspondences,)
    assert bool(jnp.all(jnp.isfinite(w)))
    print("KERNEL_OK")
</pallas_src>

<mosaic_0001>
module attributes {stable_mosaic.version = 11 : i64} {
  func.func @_match_kernel(%arg0: i32, %arg1: i32, %arg2: memref<34x128xbf16, #tpu.memory_space<vmem>>, %arg3: memref<128x34xbf16, #tpu.memory_space<vmem>>, %arg4: memref<1x128xf32, #tpu.memory_space<vmem>>, %arg5: memref<1x128xf32, #tpu.memory_space<vmem>>, %arg6: memref<1x128xi32, #tpu.memory_space<vmem>>, %arg7: memref<1x128xi32, #tpu.memory_space<vmem>>, %arg8: memref<1x128xf32, #tpu.memory_space<vmem>>, %arg9: memref<1x128xf32, #tpu.memory_space<vmem>>, %arg10: memref<1x128xi32, #tpu.memory_space<vmem>>, %arg11: memref<1x128xi32, #tpu.memory_space<vmem>>) attributes {dimension_semantics = [#tpu.dimension_semantics<parallel>, #tpu.dimension_semantics<arbitrary>], iteration_bounds = array<i64: 1, 1>, scalar_prefetch = 0 : i64, scratch_operands = 4 : i64, tpu.core_type = #tpu.core_type<tc>, window_params = [{transform_indices = @transform_0, window_bounds = array<i64: 34, 128>}, {transform_indices = @transform_1, window_bounds = array<i64: 128, 34>}, {transform_indices = @transform_2, window_bounds = array<i64: 1, 128>}, {transform_indices = @transform_3, window_bounds = array<i64: 1, 128>}, {transform_indices = @transform_4, window_bounds = array<i64: 1, 128>}, {transform_indices = @transform_5, window_bounds = array<i64: 1, 128>}]} {
    %c0_i32 = arith.constant 0 : i32
    %0 = arith.cmpi eq, %arg1, %c0_i32 : i32
    %1 = arith.extui %0 : i1 to i32
    %c0_i32_0 = arith.constant 0 : i32
    %2 = arith.cmpi ne, %1, %c0_i32_0 : i32
    scf.if %2 {
      %cst_39 = arith.constant 0x7F800000 : f32
      %99 = vector.broadcast %cst_39 : f32 to vector<1x128xf32>
      %c0_40 = arith.constant 0 : index
      %c0_41 = arith.constant 0 : index
      %100 = vector.load %arg8[%c0_40, %c0_41] : memref<1x128xf32, #tpu.memory_space<vmem>>, vector<1x128xf32>
      tpu.vector_store %arg8[%c0_40, %c0_41], %99 {strides = array<i32>} : memref<1x128xf32, #tpu.memory_space<vmem>>, vector<1x128xf32>,
      %cst_42 = arith.constant 0x7F800000 : f32
      %101 = vector.broadcast %cst_42 : f32 to vector<1x128xf32>
      %c0_43 = arith.constant 0 : index
      %c0_44 = arith.constant 0 : index
      %102 = vector.load %arg9[%c0_43, %c0_44] : memref<1x128xf32, #tpu.memory_space<vmem>>, vector<1x128xf32>
      tpu.vector_store %arg9[%c0_43, %c0_44], %101 {strides = array<i32>} : memref<1x128xf32, #tpu.memory_space<vmem>>, vector<1x128xf32>,
      %c0_i32_45 = arith.constant 0 : i32
      %103 = vector.broadcast %c0_i32_45 : i32 to vector<1x128xi32>
      %c0_46 = arith.constant 0 : index
      %c0_47 = arith.constant 0 : index
      %104 = vector.load %arg10[%c0_46, %c0_47] : memref<1x128xi32, #tpu.memory_space<vmem>>, vector<1x128xi32>
      tpu.vector_store %arg10[%c0_46, %c0_47], %103 {strides = array<i32>} : memref<1x128xi32, #tpu.memory_space<vmem>>, vector<1x128xi32>,
      %c0_i32_48 = arith.constant 0 : i32
      %105 = vector.broadcast %c0_i32_48 : i32 to vector<1x128xi32>
      %c0_49 = arith.constant 0 : index
      %c0_50 = arith.constant 0 : index
      %106 = vector.load %arg11[%c0_49, %c0_50] : memref<1x128xi32, #tpu.memory_space<vmem>>, vector<1x128xi32>
      tpu.vector_store %arg11[%c0_49, %c0_50], %105 {strides = array<i32>} : memref<1x128xi32, #tpu.memory_space<vmem>>, vector<1x128xi32>,
    } else {
    }
    %c0 = arith.constant 0 : index
    %c0_1 = arith.constant 0 : index
    %3 = vector.load %arg2[%c0, %c0_1] : memref<34x128xbf16, #tpu.memory_space<vmem>>, vector<34x128xbf16>
    %4 = tpu.iota {dimensions = array<i32: 0>} : vector<64x128xi32>
    %c128_i32 = arith.constant 128 : i32
    %5 = arith.muli %arg1, %c128_i32 : i32
    %c0_2 = arith.constant 0 : index
    %c0_3 = arith.constant 0 : index
    %6 = vector.load %arg8[%c0_2, %c0_3] : memref<1x128xf32, #tpu.memory_space<vmem>>, vector<1x128xf32>
    %c0_4 = arith.constant 0 : index
    %c0_5 = arith.constant 0 : index
    %7 = vector.load %arg9[%c0_4, %c0_5] : memref<1x128xf32, #tpu.memory_space<vmem>>, vector<1x128xf32>
    %c0_6 = arith.constant 0 : index
    %c0_7 = arith.constant 0 : index
    %8 = vector.load %arg10[%c0_6, %c0_7] : memref<1x128xi32, #tpu.memory_space<vmem>>, vector<1x128xi32>
    %c0_8 = arith.constant 0 : index
    %c0_9 = arith.constant 0 : index
    %9 = vector.load %arg11[%c0_8, %c0_9] : memref<1x128xi32, #tpu.memory_space<vmem>>, vector<1x128xi32>
    %c0_i32_10 = arith.constant 0 : i32
    %c64_i32 = arith.constant 64 : i32
    %10 = arith.muli %c0_i32_10, %c64_i32 : i32
    %11 = tpu.assume_multiple %10, 64 : i32
    %12 = arith.index_cast %11 : i32 to index
    %c0_11 = arith.constant 0 : index
    %13 = vector.load %arg3[%12, %c0_11] : memref<128x34xbf16, #tpu.memory_space<vmem>>, vector<64x34xbf16>
    %cst = arith.constant dense<0.000000e+00> : vector<64x128xf32>
    %14 = tpu.matmul %13, %3, %cst {dimension_numbers = #tpu.dot_dimension_numbers<[1], [0], [0], [1], [0, 0, 1, 1], [], []>} : vector<64x34xbf16>, vector<34x128xbf16>, vector<64x128xf32> -> vector<64x128xf32>
    %cst_12 = arith.constant dense<0x7F800000> : vector<128xf32>
    %15 = vector.multi_reduction <minimumf>, %14, %cst_12 [0] : vector<64x128xf32> to vector<128xf32>
    %16 = vector.shape_cast %15 : vector<128xf32> to vector<1x128xf32>
    %17 = vector.broadcast %16 : vector<1x128xf32> to vector<64x128xf32>
    %18 = arith.cmpf oeq, %14, %17 : vector<64x128xf32>
    %c64_i32_13 = arith.constant 64 : i32
    %19 = vector.broadcast %c64_i32_13 : i32 to vector<64x128xi32>
    %20 = arith.select %18, %4, %19 : vector<64x128xi1>, vector<64x128xi32>
    %cst_14 = arith.constant dense<2147483647> : vector<128xi32>
    %21 = vector.multi_reduction <minsi>, %20, %cst_14 [0] : vector<64x128xi32> to vector<128xi32>
    %22 = vector.shape_cast %21 : vector<128xi32> to vector<1x128xi32>
    %23 = vector.broadcast %22 : vector<1x128xi32> to vector<64x128xi32>
    %24 = arith.cmpi eq, %4, %23 : vector<64x128xi32>
    %cst_15 = arith.constant 0x7F800000 : f32
    %25 = vector.broadcast %cst_15 : f32 to vector<64x128xf32>
    %26 = arith.select %24, %25, %14 : vector<64x128xi1>, vector<64x128xf32>
    %cst_16 = arith.constant dense<0x7F800000> : vector<128xf32>
    %27 = vector.multi_reduction <minimumf>, %26, %cst_16 [0] : vector<64x128xf32> to vector<128xf32>
    %28 = vector.shape_cast %27 : vector<128xf32> to vector<1x128xf32>
    %29 = vector.broadcast %28 : vector<1x128xf32> to vector<64x128xf32>
    %30 = arith.cmpf oeq, %26, %29 : vector<64x128xf32>
    %c64_i32_17 = arith.constant 64 : i32
    %31 = vector.broadcast %c64_i32_17 : i32 to vector<64x128xi32>
    %32 = arith.select %30, %4, %31 : vector<64x128xi1>, vector<64x128xi32>
    %cst_18 = arith.constant dense<2147483647> : vector<128xi32>
    %33 = vector.multi_reduction <minsi>, %32, %cst_18 [0] : vector<64x128xi32> to vector<128xi32>
    %34 = vector.shape_cast %33 : vector<128xi32> to vector<1x128xi32>
    %35 = arith.addi %5, %11 : i32
    %36 = vector.broadcast %35 : i32 to vector<1x128xi32>
    %37 = arith.addi %22, %36 : vector<1x128xi32>
    %38 = vector.broadcast %35 : i32 to vector<1x128xi32>
    %39 = arith.addi %34, %38 : vector<1x128xi32>
    %40 = arith.cmpf olt, %16, %6 : vector<1x128xf32>
    %41 = arith.select %40, %16, %6 : vector<1x128xi1>, vector<1x128xf32>
    %42 = arith.select %40, %37, %8 : vector<1x128xi1>, vector<1x128xi32>
    %43 = arith.minimumf %6, %28 : vector<1x128xf32>
    %44 = arith.cmpf olt, %28, %6 : vector<1x128xf32>
    %45 = arith.select %44, %39, %8 : vector<1x128xi1>, vector<1x128xi32>
    %46 = arith.minimumf %7, %16 : vector<1x128xf32>
    %47 = arith.cmpf olt, %16, %7 : vector<1x128xf32>
    %48 = arith.select %47, %37, %9 : vector<1x128xi1>, vector<1x128xi32>
    %49 = arith.select %40, %43, %46 : vector<1x128xi1>, vector<1x128xf32>
    %50 = arith.select %40, %45, %48 : vector<1x128xi1>, vector<1x128xi32>
    %c1_i32 = arith.constant 1 : i32
    %c64_i32_19 = arith.constant 64 : i32
    %51 = arith.muli %c1_i32, %c64_i32_19 : i32
    %52 = tpu.assume_multiple %51, 64 : i32
    %53 = arith.index_cast %52 : i32 to index
    %c0_20 = arith.constant 0 : index
    %54 = vector.load %arg3[%53, %c0_20] : memref<128x34xbf16, #tpu.memory_space<vmem>>, vector<64x34xbf16>
    %cst_21 = arith.constant dense<0.000000e+00> : vector<64x128xf32>
    %55 = tpu.matmul %54, %3, %cst_21 {dimension_numbers = #tpu.dot_dimension_numbers<[1], [0], [0], [1], [0, 0, 1, 1], [], []>} : vector<64x34xbf16>, vector<34x128xbf16>, vector<64x128xf32> -> vector<64x128xf32>
    %cst_22 = arith.constant dense<0x7F800000> : vector<128xf32>
    %56 = vector.multi_reduction <minimumf>, %55, %cst_22 [0] : vector<64x128xf32> to vector<128xf32>
    %57 = vector.shape_cast %56 : vector<128xf32> to vector<1x128xf32>
    %58 = vector.broadcast %57 : vector<1x128xf32> to vector<64x128xf32>
    %59 = arith.cmpf oeq, %55, %58 : vector<64x128xf32>
    %c64_i32_23 = arith.constant 64 : i32
    %60 = vector.broadcast %c64_i32_23 : i32 to vector<64x128xi32>
    %61 = arith.select %59, %4, %60 : vector<64x128xi1>, vector<64x128xi32>
    %cst_24 = arith.constant dense<2147483647> : vector<128xi32>
    %62 = vector.multi_reduction <minsi>, %61, %cst_24 [0] : vector<64x128xi32> to vector<128xi32>
    %63 = vector.shape_cast %62 : vector<128xi32> to vector<1x128xi32>
    %64 = vector.broadcast %63 : vector<1x128xi32> to vector<64x128xi32>
    %65 = arith.cmpi eq, %4, %64 : vector<64x128xi32>
    %cst_25 = arith.constant 0x7F800000 : f32
    %66 = vector.broadcast %cst_25 : f32 to vector<64x128xf32>
    %67 = arith.select %65, %66, %55 : vector<64x128xi1>, vector<64x128xf32>
    %cst_26 = arith.constant dense<0x7F800000> : vector<128xf32>
    %68 = vector.multi_reduction <minimumf>, %67, %cst_26 [0] : vector<64x128xf32> to vector<128xf32>
    %69 = vector.shape_cast %68 : vector<128xf32> to vector<1x128xf32>
    %70 = vector.broadcast %69 : vector<1x128xf32> to vector<64x128xf32>
    %71 = arith.cmpf oeq, %67, %70 : vector<64x128xf32>
    %c64_i32_27 = arith.constant 64 : i32
    %72 = vector.broadcast %c64_i32_27 : i32 to vector<64x128xi32>
    %73 = arith.select %71, %4, %72 : vector<64x128xi1>, vector<64x128xi32>
    %cst_28 = arith.constant dense<2147483647> : vector<128xi32>
    %74 = vector.multi_reduction <minsi>, %73, %cst_28 [0] : vector<64x128xi32> to vector<128xi32>
    %75 = vector.shape_cast %74 : vector<128xi32> to vector<1x128xi32>
    %76 = arith.addi %5, %52 : i32
    %77 = vector.broadcast %76 : i32 to vector<1x128xi32>
    %78 = arith.addi %63, %77 : vector<1x128xi32>
    %79 = vector.broadcast %76 : i32 to vector<1x128xi32>
    %80 = arith.addi %75, %79 : vector<1x128xi32>
    %81 = arith.cmpf olt, %57, %41 : vector<1x128xf32>
    %82 = arith.select %81, %57, %41 : vector<1x128xi1>, vector<1x128xf32>
    %83 = arith.select %81, %78, %42 : vector<1x128xi1>, vector<1x128xi32>
    %84 = arith.minimumf %41, %69 : vector<1x128xf32>
    %85 = arith.cmpf olt, %69, %41 : vector<1x128xf32>
    %86 = arith.select %85, %80, %42 : vector<1x128xi1>, vector<1x128xi32>
    %87 = arith.minimumf %49, %57 : vector<1x128xf32>
    %88 = arith.cmpf olt, %57, %49 : vector<1x128xf32>
    %89 = arith.select %88, %78, %50 : vector<1x128xi1>, vector<1x128xi32>
    %90 = arith.select %81, %84, %87 : vector<1x128xi1>, vector<1x128xf32>
    %91 = arith.select %81, %86, %89 : vector<1x128xi1>, vector<1x128xi32>
    %c2_i32 = arith.constant 2 : i32
    %c0_29 = arith.constant 0 : index
    %c0_30 = arith.constant 0 : index
    %92 = vector.load %arg8[%c0_29, %c0_30] : memref<1x128xf32, #tpu.memory_space<vmem>>, vector<1x128xf32>
    tpu.vector_store %arg8[%c0_29, %c0_30], %82 {strides = array<i32>} : memref<1x128xf32, #tpu.memory_space<vmem>>, vector<1x128xf32>,
    %c0_31 = arith.constant 0 : index
    %c0_32 = arith.constant 0 : index
    %93 = vector.load %arg9[%c0_31, %c0_32] : memref<1x128xf32, #tpu.memory_space<vmem>>, vector<1x128xf32>
    tpu.vector_store %arg9[%c0_31, %c0_32], %90 {strides = array<i32>} : memref<1x128xf32, #tpu.memory_space<vmem>>, vector<1x128xf32>,
    %c0_33 = arith.constant 0 : index
    %c0_34 = arith.constant 0 : index
    %94 = vector.load %arg10[%c0_33, %c0_34] : memref<1x128xi32, #tpu.memory_space<vmem>>, vector<1x128xi32>
    tpu.vector_store %arg10[%c0_33, %c0_34], %83 {strides = array<i32>} : memref<1x128xi32, #tpu.memory_space<vmem>>, vector<1x128xi32>,
    %c0_35 = arith.constant 0 : index
    %c0_36 = arith.constant 0 : index
    %95 = vector.load %arg11[%c0_35, %c0_36] : memref<1x128xi32, #tpu.memory_space<vmem>>, vector<1x128xi32>
    tpu.vector_store %arg11[%c0_35, %c0_36], %91 {strides = array<i32>} : memref<1x128xi32, #tpu.memory_space<vmem>>, vector<1x128xi32>,
    %c0_i32_37 = arith.constant 0 : i32
    %96 = arith.cmpi eq, %arg1, %c0_i32_37 : i32
    %97 = arith.extui %96 : i1 to i32
    %c0_i32_38 = arith.constant 0 : i32
    %98 = arith.cmpi ne, %97, %c0_i32_38 : i32
    scf.if %98 {
      %c0_39 = arith.constant 0 : index
      %c0_40 = arith.constant 0 : index
      %99 = vector.load %arg8[%c0_39, %c0_40] : memref<1x128xf32, #tpu.memory_space<vmem>>, vector<1x128xf32>
      %c0_41 = arith.constant 0 : index
      %c0_42 = arith.constant 0 : index
      %100 = vector.load %arg4[%c0_41, %c0_42] : memref<1x128xf32, #tpu.memory_space<vmem>>, vector<1x128xf32>
      tpu.vector_store %arg4[%c0_41, %c0_42], %99 {strides = array<i32>} : memref<1x128xf32, #tpu.memory_space<vmem>>, vector<1x128xf32>,
      %c0_43 = arith.constant 0 : index
      %c0_44 = arith.constant 0 : index
      %101 = vector.load %arg9[%c0_43, %c0_44] : memref<1x128xf32, #tpu.memory_space<vmem>>, vector<1x128xf32>
      %c0_45 = arith.constant 0 : index
      %c0_46 = arith.constant 0 : index
      %102 = vector.load %arg5[%c0_45, %c0_46] : memref<1x128xf32, #tpu.memory_space<vmem>>, vector<1x128xf32>
      tpu.vector_store %arg5[%c0_45, %c0_46], %101 {strides = array<i32>} : memref<1x128xf32, #tpu.memory_space<vmem>>, vector<1x128xf32>,
      %c0_47 = arith.constant 0 : index
      %c0_48 = arith.constant 0 : index
      %103 = vector.load %arg10[%c0_47, %c0_48] : memref<1x128xi32, #tpu.memory_space<vmem>>, vector<1x128xi32>
      %c0_49 = arith.constant 0 : index
      %c0_50 = arith.constant 0 : index
      %104 = vector.load %arg6[%c0_49, %c0_50] : memref<1x128xi32, #tpu.memory_space<vmem>>, vector<1x128xi32>
      tpu.vector_store %arg6[%c0_49, %c0_50], %103 {strides = array<i32>} : memref<1x128xi32, #tpu.memory_space<vmem>>, vector<1x128xi32>,
      %c0_51 = arith.constant 0 : index
      %c0_52 = arith.constant 0 : index
      %105 = vector.load %arg11[%c0_51, %c0_52] : memref<1x128xi32, #tpu.memory_space<vmem>>, vector<1x128xi32>
      %c0_53 = arith.constant 0 : index
      %c0_54 = arith.constant 0 : index
      %106 = vector.load %arg7[%c0_53, %c0_54] : memref<1x128xi32, #tpu.memory_space<vmem>>, vector<1x128xi32>
      tpu.vector_store %arg7[%c0_53, %c0_54], %105 {strides = array<i32>} : memref<1x128xi32, #tpu.memory_space<vmem>>, vector<1x128xi32>,
    } else {
    }
    return
  }
  func.func @transform_0(%arg0: i32, %arg1: i32) -> (i32, i32) {
    %c0_i32 = arith.constant 0 : i32
    %c0_i32_0 = arith.constant 0 : i32
    return %c0_i32, %arg0 : i32, i32
  }
  func.func @transform_1(%arg0: i32, %arg1: i32) -> (i32, i32) {
    %c0_i32 = arith.constant 0 : i32
    %c0_i32_0 = arith.constant 0 : i32
    return %arg1, %c0_i32 : i32, i32
  }
  func.func @transform_2(%arg0: i32, %arg1: i32) -> (i32, i32) {
    %c0_i32 = arith.constant 0 : i32
    %c0_i32_0 = arith.constant 0 : i32
    return %arg0, %c0_i32 : i32, i32
  }
  func.func @transform_3(%arg0: i32, %arg1: i32) -> (i32, i32) {
    %c0_i32 = arith.constant 0 : i32
    %c0_i32_0 = arith.constant 0 : i32
    return %arg0, %c0_i32 : i32, i32
  }
  func.func @transform_4(%arg0: i32, %arg1: i32) -> (i32, i32) {
    %c0_i32 = arith.constant 0 : i32
    %c0_i32_0 = arith.constant 0 : i32
    return %arg0, %c0_i32 : i32, i32
  }
  func.func @transform_5(%arg0: i32, %arg1: i32) -> (i32, i32) {
    %c0_i32 = arith.constant 0 : i32
    %c0_i32_0 = arith.constant 0 : i32
    return %arg0, %c0_i32 : i32, i32
  }
}

</mosaic_0001>

<bundles_post_ra>
// kernel: tpu_custom_call.1
= control target key start
LH: loop header
LB: loop body
LE: loop exit
PB: predicated region body
PF: predicated region fallthrough
CT: control target
= control target key end

     0   :  { %11 = vsyncpa [#allocation7], 0  ;;  %s1164_s0 = inlined_call_operand.vmem [shape: bf16[34,128], index: 0, kind: input, shape index: {}]   ;;  %s1165_s1 = inlined_call_operand.vmem [shape: bf16[128,34], index: 1, kind: input, shape index: {}]   ;;  %s1166_s2 = inlined_call_operand.hbm [shape: f32[1,128], index: 2, kind: output, shape index: {0}]   ;;  %s1167_s3 = inlined_call_operand.hbm [shape: f32[1,128], index: 3, kind: output, shape index: {1}]   ;;  %s1168_s4 = inlined_call_operand.hbm [shape: s32[1,128], index: 4, kind: output, shape index: {2}]   ;;  %s1169_s5 = inlined_call_operand.hbm [shape: s32[1,128], index: 5, kind: output, shape index: {3}]  }
   0x1   :  { %12 = vsyncpa [#allocation9], 0  ;;  %v31_v0 = vld [vmem:[%s1164_s0 + $0x10] sm:$0x1]  ;;  %vm102_vm0 = vcmask 1040384  }
   0x2   :  { %v83_v1 = vunpack.c.l.b16 %v31_v0 }
   0x4   :  { %v86_v2 = vpack.c.b16 %v83_v1, %v83_v1 }
   0x5   :  { %13 = vsyncpa [#allocation12], 0  ;;  %v610_v4 = vld [vmem:[%s1164_s0 + $0x8] sm:$0xff]  ;;  %v609_v5 = vld [vmem:[%s1164_s0] sm:$0xff]  ;;  %vm89_vm1 = vcmask 277504   ;;  %v733_v14 = vmov inf   ;;  %v32_v47 = vlaneseq }
   0x6   :  { %v104_v3 = vsel %vm102_vm0, %v86_v2, 0  ;;  %v611_v6 = vld [vmem:[%s1165_s1] sm:$0xff]  ;;  %v613_v7 = vld [vmem:[%s1165_s1 + $0x10] sm:$0xff]  ;;  %v612_v10 = vld [vmem:[%s1165_s1 + $0x8] sm:$0xff]  ;;  %23 = vst [vmem:[#allocation2] sm:$0x1] %v733_v14 }
   0x7   :  { %111 = vmatpush.bf16.msra.mxu0 %v104_v3  ;;  %619 = vmatpush.bf16.msra.mxu2 %v104_v3  ;;  %v615_v8 = vld [vmem:[%s1165_s1 + $0x20] sm:$0xff]  ;;  %v617_v9 = vld [vmem:[%s1165_s1 + $0x30] sm:$0xff]  ;;  %v614_v11 = vld [vmem:[%s1165_s1 + $0x18] sm:$0xff]  ;;  %24 = vst [vmem:[#allocation3] sm:$0x1] %v733_v14  ;;  %v734_v15 = vmov 0  }
   0x8   :  { %316 = vmatpush.bf16.msra.mxu1 %v104_v3  ;;  %622 = vmatpush.bf16.msra.mxu3 %v104_v3  ;;  %v616_v12 = vld [vmem:[%s1165_s1 + $0x28] sm:$0xff]  ;;  %v618_v13 = vld [vmem:[%s1165_s1 + $0x38] sm:$0xff]  ;;  %25 = vst [vmem:[#allocation4] sm:$0x1] %v734_v15  ;;  %v858_v52 = vshrl.u32 %v32_v47, 7  ;;  %s735_s1 = smov [#allocation6]  }
   0x9   :  { %26 = vst [vmem:[#allocation5] sm:$0x1] %v734_v15  ;;  %s951_s14 = sshll.u32 %s735_s1, 4  ;;  %s497_s17 = sshll.u32 %s1166_s2, 4  ;;  %s496_s14 = int_to_ptr.vmem [resolvable:$true] %s951_s14  ;;  %s498_s17 = int_to_ptr.hbm [resolvable:$true] %s497_s17 }
   0xa   :  { %v861_v57 = vadd.s32 8, %v858_v52  ;;  %v864_v59 = vadd.s32 16, %v858_v52  ;;  %v867_v60 = vadd.s32 24, %v858_v52  ;;  %v870_v61 = vadd.s32 32, %v858_v52  ;;  %s736_s2 = smov [#allocation8]   ;;  %s508_s21 = sshll.u32 %s1167_s3, 4  ;;  %s509_s21 = int_to_ptr.hbm [resolvable:$true] %s508_s21 }
   0xb   :  { %112 = vmatpush.bf16.msra.mxu0 %v610_v4  ;;  %620 = vmatpush.bf16.msra.mxu2 %v610_v4  ;;  %v875_v63 = vadd.s32 40, %v858_v52  ;;  %v878_v0 = vadd.s32 48, %v858_v52  ;;  %v881_v1 = vadd.s32 56, %v858_v52  ;;  %s506_s18 = sshll.u32 %s736_s2, 4  ;;  %s737_s22 = smov [#allocation10]   ;;  %s507_s18 = int_to_ptr.vmem [resolvable:$true] %s506_s18 }
   0xc   :  { %317 = vmatpush.bf16.msra.mxu1 %v610_v4  ;;  %623 = vmatpush.bf16.msra.mxu3 %v610_v4  ;;  %s517_s23 = sshll.u32 %s737_s22, 4  ;;  %s519_s26 = sshll.u32 %s1168_s4, 4  ;;  %s518_s23 = int_to_ptr.vmem [resolvable:$true] %s517_s23  ;;  %s520_s26 = int_to_ptr.hbm [resolvable:$true] %s519_s26 }
   0xd   :  { %s738_s3 = smov [#allocation11]   ;;  %s530_s29 = sshll.u32 %s1169_s5, 4  ;;  %s531_s29 = int_to_ptr.hbm [resolvable:$true] %s530_s29 }
   0xe   :  { %s528_s4 = sshll.u32 %s738_s3, 4  ;;  %s529_s4 = int_to_ptr.vmem [resolvable:$true] %s528_s4 }
   0xf   :  { %113 = vmatpush.bf16.msra.mxu0 %v609_v5  ;;  %621 = vmatpush.bf16.msra.mxu2 %v609_v5 }
  0x10   :  { %318 = vmatpush.bf16.msra.mxu1 %v609_v5  ;;  %624 = vmatpush.bf16.msra.mxu3 %v609_v5 }
  0x12   :  { %577 = vmatmul.msk.bf16.vlgmr.msra.gmra.mxu0 %vm89_vm1, %v611_v6  ;;  %579 = vmatmul.msk.bf16.vlgmr.msra.gmra.mxu2 %vm89_vm1, %v613_v7  ;;  %v905_v7 = vld [vmem:[#allocation2] sm:$0x1] }
  0x13   :  { %605 = vmatmul.msk.bf16.vlgmr.msra.gmra.mxu1 %vm89_vm1, %v615_v8  ;;  %607 = vmatmul.msk.bf16.vlgmr.msra.gmra.mxu3 %vm89_vm1, %v617_v9 }
  0x22   :  { %578 = vmatmul.msk.bf16.gmra.mxu0 %vm89_vm1, %v612_v10  ;;  %580 = vmatmul.msk.bf16.gmra.mxu2 %vm89_vm1, %v614_v11 }
  0x23   :  { %606 = vmatmul.msk.bf16.gmra.mxu1 %vm89_vm1, %v616_v12  ;;  %608 = vmatmul.msk.bf16.gmra.mxu3 %vm89_vm1, %v618_v13 }
  0x8f   :  { %v810_v16 = vpop.f32.mrf.mxu0 }
  0x90   :  { %v812_v17 = vpop.f32.mrf.mxu1 }
  0x95   :  { %v814_v18 = vpop.f32.mrf.mxu2 }
  0x96   :  { %v816_v19 = vpop.f32.mrf.mxu3  ;;  %v135_v32 = vmin.f32 %v810_v16, %v814_v18 }
  0x97   :  { %v818_v20 = vpop.f32.mrf.mxu0  ;;  %v340_v37 = vmin.f32 %v812_v17, %v816_v19 }
  0x98   :  { %v820_v21 = vpop.f32.mrf.mxu1 }
  0x9d   :  { %v822_v22 = vpop.f32.mrf.mxu2 }
  0x9e   :  { %v824_v23 = vpop.f32.mrf.mxu3  ;;  %v136_v28 = vmin.f32 %v818_v20, %v822_v22 }
  0x9f   :  { %v826_v24 = vpop.f32.mrf.mxu0  ;;  %v341_v29 = vmin.f32 %v820_v21, %v824_v23 }
  0xa0   :  { %v828_v25 = vpop.f32.mrf.mxu1  ;;  %v139_v40 = vmin.f32 %v135_v32, %v136_v28 }
  0xa1   :  { %v344_v42 = vmin.f32 %v340_v37, %v341_v29 }
  0xa5   :  { %v830_v26 = vpop.f32.mrf.mxu2 }
  0xa6   :  { %v832_v27 = vpop.f32.mrf.mxu3  ;;  %v137_v33 = vmin.f32 %v826_v24, %v830_v26 }
  0xa7   :  { %v838_v30 = vpop.f32.mrf.mxu0  ;;  %v342_v38 = vmin.f32 %v828_v25, %v832_v27 }
  0xa8   :  { %v846_v34 = vpop.f32.mrf.mxu1 }
  0xad   :  { %v840_v31 = vpop.f32.mrf.mxu2 }
  0xae   :  { %v138_v35 = vmin.f32 %v838_v30, %v840_v31  ;;  %v850_v36 = vpop.f32.mrf.mxu3 }
  0xaf   :  { %v343_v39 = vmin.f32 %v846_v34, %v850_v36 }
  0xb0   :  { %v140_v41 = vmin.f32 %v137_v33, %v138_v35 }
  0xb1   :  { %v345_v43 = vmin.f32 %v342_v38, %v343_v39 }
  0xb2   :  { %v141_v44 = vmin.f32 %v139_v40, %v140_v41 }
  0xb3   :  { %v346_v45 = vmin.f32 %v344_v42, %v345_v43 }
  0xb4   :  { %v142_v46 = vrot.slane %v141_v44, 4 }
  0xb5   :  { %v347_v48 = vrot.slane %v346_v45, 4 }
  0xb6   :  { %v143_v49 = vmin.f32 %v141_v44, %v142_v46 }
  0xb7   :  { %v348_v50 = vmin.f32 %v346_v45, %v347_v48 }
  0xb8   :  { %v144_v51 = vrot.slane %v143_v49, 2 }
  0xb9   :  { %v349_v53 = vrot.slane %v348_v50, 2 }
  0xba   :  { %v145_v54 = vmin.f32 %v143_v49, %v144_v51 }
  0xbb   :  { %v350_v55 = vmin.f32 %v348_v50, %v349_v53 }
  0xbc   :  { %v146_v56 = vrot.slane %v145_v54, 1 }
  0xbd   :  { %v351_v58 = vrot.slane %v350_v55, 1 }
  0xbe   :  { %v872_v62 = vmin.f32 %v145_v54, %v146_v56 }
  0xbf   :  { %v883_v2 = vmin.f32 %v350_v55, %v351_v58 }
  0xc0   :  { %vm148_vm2 = vcmp.eq.f32.partialorder %v810_v16, %v872_v62  ;;  %vm149_vm3 = vcmp.eq.f32.partialorder %v818_v20, %v872_v62  ;;  %vm150_vm4 = vcmp.eq.f32.partialorder %v826_v24, %v872_v62  ;;  %vm151_vm5 = vcmp.eq.f32.partialorder %v838_v30, %v872_v62 }
  0xc1   :  { %vm152_vm6 = vcmp.eq.f32.partialorder %v814_v18, %v872_v62  ;;  %vm153_vm7 = vcmp.eq.f32.partialorder %v822_v22, %v872_v62  ;;  %vm154_vm8 = vcmp.eq.f32.partialorder %v830_v26, %v872_v62  ;;  %vm155_vm9 = vcmp.eq.f32.partialorder %v840_v31, %v872_v62 }
  0xc2   :  { %v156_v3 = vsel %vm148_vm2, %v858_v52, 64  ;;  %v157_v4 = vsel %vm149_vm3, %v861_v57, 64  ;;  %v158_v5 = vsel %vm150_vm4, %v864_v59, 64  ;;  %v159_v6 = vsel %vm151_vm5, %v867_v60, 64 }
  0xc3   :  { %v160_v8 = vsel %vm152_vm6, %v870_v61, 64  ;;  %v161_v9 = vsel %vm153_vm7, %v875_v63, 64  ;;  %v162_v10 = vsel %vm154_vm8, %v878_v0, 64  ;;  %v163_v11 = vsel %vm155_vm9, %v881_v1, 64 }
  0xc4   :  { %vm164_vm10 = vcmp.lt.s32.totalorder %v156_v3, %v160_v8  ;;  %vm166_vm11 = vcmp.lt.s32.totalorder %v157_v4, %v161_v9  ;;  %vm168_vm12 = vcmp.lt.s32.totalorder %v158_v5, %v162_v10  ;;  %vm170_vm13 = vcmp.lt.s32.totalorder %v159_v6, %v163_v11 }
  0xc5   :  { %v165_v12 = vsel %vm164_vm10, %v156_v3, %v160_v8  ;;  %v167_v13 = vsel %vm166_vm11, %v157_v4, %v161_v9  ;;  %v169_v14 = vsel %vm168_vm12, %v158_v5, %v162_v10  ;;  %v171_v15 = vsel %vm170_vm13, %v159_v6, %v163_v11 }
  0xc6   :  { %vm172_vm14 = vcmp.lt.s32.totalorder %v165_v12, %v167_v13  ;;  %vm174_vm15 = vcmp.lt.s32.totalorder %v169_v14, %v171_v15  ;;  %vm259_vm0 = vcmp.lt.f32.partialorder %v872_v62, %v905_v7  ;;  %vm353_vm2 = vcmp.eq.f32.partialorder %v812_v17, %v883_v2 }
  0xc7   :  { %v173_v28 = vsel %vm172_vm14, %v165_v12, %v167_v13  ;;  %v175_v29 = vsel %vm174_vm15, %v169_v14, %v171_v15  ;;  %v918_v32 = vsel %vm259_vm0, %v872_v62, %v905_v7  ;;  %vm354_vm3 = vcmp.eq.f32.partialorder %v820_v21, %v883_v2 }
  0xc8   :  { %vm176_vm1 = vcmp.lt.s32.totalorder %v173_v28, %v175_v29  ;;  %vm355_vm4 = vcmp.eq.f32.partialorder %v828_v25, %v883_v2  ;;  %vm356_vm5 = vcmp.eq.f32.partialorder %v846_v34, %v883_v2  ;;  %vm357_vm6 = vcmp.eq.f32.partialorder %v816_v19, %v883_v2 }
  0xc9   :  { %v177_v33 = vsel %vm176_vm1, %v173_v28, %v175_v29  ;;  %vm358_vm7 = vcmp.eq.f32.partialorder %v824_v23, %v883_v2  ;;  %vm359_vm8 = vcmp.eq.f32.partialorder %v832_v27, %v883_v2  ;;  %vm360_vm9 = vcmp.eq.f32.partialorder %v850_v36, %v883_v2 }
  0xca   :  { %v178_v35 = vrot.slane %v177_v33, 4  ;;  %v361_v37 = vsel %vm353_vm2, %v858_v52, 64  ;;  %v362_v38 = vsel %vm354_vm3, %v861_v57, 64  ;;  %v363_v39 = vsel %vm355_vm4, %v864_v59, 64 }
  0xcb   :  { %v364_v40 = vsel %vm356_vm5, %v867_v60, 64  ;;  %v365_v41 = vsel %vm357_vm6, %v870_v61, 64  ;;  %v366_v42 = vsel %vm358_vm7, %v875_v63, 64  ;;  %v367_v43 = vsel %vm359_vm8, %v878_v0, 64 }
  0xcc   :  { %vm179_vm10 = vcmp.lt.s32.totalorder %v177_v33, %v178_v35  ;;  %v368_v44 = vsel %vm360_vm9, %v881_v1, 64  ;;  %vm369_vm11 = vcmp.lt.s32.totalorder %v361_v37, %v365_v41  ;;  %vm371_vm12 = vcmp.lt.s32.totalorder %v362_v38, %v366_v42 }
  0xcd   :  { %v180_v45 = vsel %vm179_vm10, %v177_v33, %v178_v35  ;;  %vm373_vm13 = vcmp.lt.s32.totalorder %v363_v39, %v367_v43  ;;  %v370_v47 = vsel %vm369_vm11, %v361_v37, %v365_v41  ;;  %v372_v48 = vsel %vm371_vm12, %v362_v38, %v366_v42  ;;  %v1016_v41 = vld [vmem:[#allocation4] sm:$0x1] }
  0xce   :  { %v181_v46 = vrot.slane %v180_v45, 2  ;;  %v374_v49 = vsel %vm373_vm13, %v363_v39, %v367_v43  ;;  %vm375_vm14 = vcmp.lt.s32.totalorder %v364_v40, %v368_v44  ;;  %vm377_vm15 = vcmp.lt.s32.totalorder %v370_v47, %v372_v48  ;;  %v1011_v39 = vld [vmem:[#allocation3] sm:$0x1] }
  0xcf   :  { %vm464_vm1 = vcmp.lt.f32.partialorder %v883_v2, %v918_v32  ;;  %v376_v50 = vsel %vm375_vm14, %v364_v40, %v368_v44  ;;  %v378_v51 = vsel %vm377_vm15, %v370_v47, %v372_v48 }
  0xd0   :  { %vm182_vm2 = vcmp.lt.s32.totalorder %v180_v45, %v181_v46  ;;  %v465_v53 = vsel %vm464_vm1, %v883_v2, %v918_v32  ;;  %vm379_vm3 = vcmp.lt.s32.totalorder %v374_v49, %v376_v50 }
  0xd1   :  { %v183_v54 = vsel %vm182_vm2, %v180_v45, %v181_v46  ;;  %475 = vst [vmem:[#allocation2] sm:$0x1] %v465_v53  ;;  %v380_v56 = vsel %vm379_vm3, %v374_v49, %v376_v50 }
  0xd2   :  { %v184_v55 = vrot.slane %v183_v54, 1  ;;  %vm381_vm4 = vcmp.lt.s32.totalorder %v378_v51, %v380_v56 }
  0xd3   :  { %v382_v58 = vsel %vm381_vm4, %v378_v51, %v380_v56 }
  0xd4   :  { %vm185_vm5 = vcmp.lt.s32.totalorder %v183_v54, %v184_v55  ;;  %v383_v4 = vrot.slane %v382_v58, 4 }
  0xd5   :  { %v956_v3 = vsel %vm185_vm5, %v183_v54, %v184_v55 }
  0xd6   :  { %vm187_vm6 = vcmp.eq.s32.totalorder %v858_v52, %v956_v3  ;;  %vm188_vm7 = vcmp.eq.s32.totalorder %v861_v57, %v956_v3  ;;  %vm189_vm8 = vcmp.eq.s32.totalorder %v864_v59, %v956_v3  ;;  %vm190_vm9 = vcmp.eq.s32.totalorder %v867_v60, %v956_v3 }
  0xd7   :  { %vm191_vm10 = vcmp.eq.s32.totalorder %v870_v61, %v956_v3  ;;  %vm192_vm11 = vcmp.eq.s32.totalorder %v875_v63, %v956_v3  ;;  %vm193_vm12 = vcmp.eq.s32.totalorder %v878_v0, %v956_v3  ;;  %vm194_vm13 = vcmp.eq.s32.totalorder %v881_v1, %v956_v3 }
  0xd8   :  { %v976_v5 = vsel %vm187_vm6, inf, %v810_v16  ;;  %v979_v6 = vsel %vm188_vm7, inf, %v818_v20  ;;  %v982_v8 = vsel %vm189_vm8, inf, %v826_v24  ;;  %v985_v9 = vsel %vm190_vm9, inf, %v838_v30  ;;  %v482_v10 = vld [vmem:[#allocation2] sm:$0x1] }
  0xd9   :  { %v988_v11 = vsel %vm191_vm10, inf, %v814_v18  ;;  %v991_v12 = vsel %vm192_vm11, inf, %v822_v22  ;;  %v994_v13 = vsel %vm193_vm12, inf, %v830_v26  ;;  %v997_v16 = vsel %vm194_vm13, inf, %v840_v31  ;;  %483 = vst [vmem:[#allocation6] sm:$0x1] %v482_v10 }
  0xda   :  { %v203_v20 = vmin.f32 %v976_v5, %v988_v11  ;;  %v204_v24 = vmin.f32 %v979_v6, %v991_v12  ;;  %v205_v18 = vmin.f32 %v982_v8, %v994_v13  ;;  %v206_v22 = vmin.f32 %v985_v9, %v997_v16  ;;  %500 = dma.vmem_to_hbm [thread:$0]  %s496_s14, 16, %s498_s17, [#allocation7]  }
  0xdb   :  { %vm384_vm14 = vcmp.lt.s32.totalorder %v382_v58, %v383_v4 }
  0xdc   :  { %v207_v26 = vmin.f32 %v203_v20, %v204_v24  ;;  %v208_v30 = vmin.f32 %v205_v18, %v206_v22  ;;  %v385_v14 = vsel %vm384_vm14, %v382_v58, %v383_v4 }
  0xdd   :  { %v386_v31 = vrot.slane %v385_v14, 2 }
  0xde   :  { %v209_v15 = vmin.f32 %v207_v26, %v208_v30 }
  0xdf   :  { %vm387_vm15 = vcmp.lt.s32.totalorder %v385_v14, %v386_v31 }
  0xe0   :  { %v210_v28 = vrot.slane %v209_v15, 4  ;;  %v388_v29 = vsel %vm387_vm15, %v385_v14, %v386_v31 }
  0xe1   :  { %v389_v33 = vrot.slane %v388_v29, 1 }
  0xe2   :  { %v211_v35 = vmin.f32 %v209_v15, %v210_v28 }
  0xe3   :  { %vm390_vm2 = vcmp.lt.s32.totalorder %v388_v29, %v389_v33 }
  0xe4   :  { %v212_v37 = vrot.slane %v211_v35, 2  ;;  %v391_v38 = vsel %vm390_vm2, %v388_v29, %v389_v33 }
  0xe5   :  { %vm392_vm3 = vcmp.eq.s32.totalorder %v858_v52, %v391_v38  ;;  %vm393_vm4 = vcmp.eq.s32.totalorder %v861_v57, %v391_v38  ;;  %vm394_vm5 = vcmp.eq.s32.totalorder %v864_v59, %v391_v38  ;;  %vm395_vm6 = vcmp.eq.s32.totalorder %v867_v60, %v391_v38 }
  0xe6   :  { %v213_v40 = vmin.f32 %v211_v35, %v212_v37  ;;  %vm396_vm7 = vcmp.eq.s32.totalorder %v870_v61, %v391_v38  ;;  %vm397_vm8 = vcmp.eq.s32.totalorder %v875_v63, %v391_v38  ;;  %vm398_vm9 = vcmp.eq.s32.totalorder %v878_v0, %v391_v38 }
  0xe7   :  { %vm399_vm10 = vcmp.eq.s32.totalorder %v881_v1, %v391_v38  ;;  %v1020_v42 = vsel %vm392_vm3, inf, %v812_v17  ;;  %v1023_v43 = vsel %vm393_vm4, inf, %v820_v21  ;;  %v1026_v44 = vsel %vm394_vm5, inf, %v828_v25 }
  0xe8   :  { %v214_v45 = vrot.slane %v213_v40, 1  ;;  %v1029_v46 = vsel %vm395_vm6, inf, %v846_v34  ;;  %v1032_v47 = vsel %vm396_vm7, inf, %v816_v19  ;;  %v1035_v48 = vsel %vm397_vm8, inf, %v824_v23 }
  0xe9   :  { %v1038_v49 = vsel %vm398_vm9, inf, %v832_v27  ;;  %v1041_v17 = vsel %vm399_vm10, inf, %v850_v36  ;;  %v408_v21 = vmin.f32 %v1020_v42, %v1032_v47  ;;  %v409_v25 = vmin.f32 %v1023_v43, %v1035_v48 }
  0xea   :  { %v1047_v34 = vmin.f32 %v213_v40, %v214_v45  ;;  %v1054_v19 = vsel %vm259_vm0, %v956_v3, %v1016_v41  ;;  %v265_v23 = vmin.f32 %v1011_v39, %v872_v62  ;;  %v410_v27 = vmin.f32 %v1026_v44, %v1038_v49  ;;  %v45_v40 = vld [vmem:[#allocation5] sm:$0x1] }
  0xeb   :  { %v411_v36 = vmin.f32 %v1029_v46, %v1041_v17  ;;  %v412_v50 = vmin.f32 %v408_v21, %v409_v25  ;;  %v1062_v51 = vadd.s32 64, %v391_v38 }
  0xec   :  { %vm216_vm11 = vcmp.eq.f32.partialorder %v976_v5, %v1047_v34  ;;  %vm217_vm12 = vcmp.eq.f32.partialorder %v979_v6, %v1047_v34  ;;  %vm218_vm13 = vcmp.eq.f32.partialorder %v982_v8, %v1047_v34  ;;  %vm219_vm14 = vcmp.eq.f32.partialorder %v985_v9, %v1047_v34 }
  0xed   :  { %vm220_vm15 = vcmp.eq.f32.partialorder %v988_v11, %v1047_v34  ;;  %vm221_vm2 = vcmp.eq.f32.partialorder %v991_v12, %v1047_v34  ;;  %vm222_vm3 = vcmp.eq.f32.partialorder %v994_v13, %v1047_v34  ;;  %vm223_vm4 = vcmp.eq.f32.partialorder %v997_v16, %v1047_v34 }
  0xee   :  { %v224_v53 = vsel %vm216_vm11, %v858_v52, 64  ;;  %v225_v54 = vsel %vm217_vm12, %v861_v57, 64  ;;  %v226_v55 = vsel %vm218_vm13, %v864_v59, 64  ;;  %v227_v56 = vsel %vm219_vm14, %v867_v60, 64 }
  0xef   :  { %v228_v58 = vsel %vm220_vm15, %v870_v61, 64  ;;  %v229_v4 = vsel %vm221_vm2, %v875_v63, 64  ;;  %v230_v5 = vsel %vm222_vm3, %v878_v0, 64  ;;  %v231_v6 = vsel %vm223_vm4, %v881_v1, 64 }
  0xf0   :  { %vm232_vm5 = vcmp.lt.s32.totalorder %v224_v53, %v228_v58  ;;  %vm234_vm6 = vcmp.lt.s32.totalorder %v225_v54, %v229_v4  ;;  %vm236_vm7 = vcmp.lt.s32.totalorder %v226_v55, %v230_v5  ;;  %vm238_vm8 = vcmp.lt.s32.totalorder %v227_v56, %v231_v6 }
  0xf1   :  { %v233_v8 = vsel %vm232_vm5, %v224_v53, %v228_v58  ;;  %v235_v9 = vsel %vm234_vm6, %v225_v54, %v229_v4  ;;  %v237_v10 = vsel %vm236_vm7, %v226_v55, %v230_v5  ;;  %v239_v11 = vsel %vm238_vm8, %v227_v56, %v231_v6 }
  0xf2   :  { %vm240_vm9 = vcmp.lt.s32.totalorder %v233_v8, %v235_v9  ;;  %vm242_vm10 = vcmp.lt.s32.totalorder %v237_v10, %v239_v11  ;;  %vm263_vm11 = vcmp.lt.f32.partialorder %v1047_v34, %v905_v7  ;;  %v262_v12 = vmin.f32 %v905_v7, %v1047_v34 }
  0xf3   :  { %v241_v13 = vsel %vm240_vm9, %v233_v8, %v235_v9  ;;  %v243_v16 = vsel %vm242_vm10, %v237_v10, %v239_v11  ;;  %v413_v20 = vmin.f32 %v410_v27, %v411_v36  ;;  %v466_v24 = vsel %vm464_vm1, %v1062_v51, %v1054_v19 }
  0xf4   :  { %vm244_vm12 = vcmp.lt.s32.totalorder %v241_v13, %v243_v16  ;;  %v268_v18 = vsel %vm259_vm0, %v262_v12, %v265_v23  ;;  %477 = vst [vmem:[#allocation4] sm:$0x1] %v466_v24  ;;  %vm266_vm3 = vcmp.lt.f32.partialorder %v872_v62, %v1011_v39 }
  0xf5   :  { %v245_v22 = vsel %vm244_vm12, %v241_v13, %v243_v16  ;;  %v414_v26 = vmin.f32 %v412_v50, %v413_v20  ;;  %vm471_vm13 = vcmp.lt.f32.partialorder %v883_v2, %v268_v18  ;;  %v267_v27 = vsel %vm266_vm3, %v956_v3, %v45_v40 }
  0xf6   :  { %v246_v30 = vrot.slane %v245_v22, 4  ;;  %v470_v36 = vmin.f32 %v268_v18, %v883_v2 }
  0xf7   :  { %v415_v14 = vrot.slane %v414_v26, 4 }
  0xf8   :  { %vm247_vm14 = vcmp.lt.s32.totalorder %v245_v22, %v246_v30 }
  0xf9   :  { %v248_v31 = vsel %vm247_vm14, %v245_v22, %v246_v30  ;;  %v416_v15 = vmin.f32 %v414_v26, %v415_v14 }
  0xfa   :  { %v249_v28 = vrot.slane %v248_v31, 2 }
  0xfb   :  { %v417_v29 = vrot.slane %v416_v15, 2  ;;  %v486_v33 = vld [vmem:[#allocation4] sm:$0x1] }
  0xfc   :  { %vm250_vm15 = vcmp.lt.s32.totalorder %v248_v31, %v249_v28  ;;  %487 = vst [vmem:[#allocation10] sm:$0x1] %v486_v33 }
  0xfd   :  { %v251_v35 = vsel %vm250_vm15, %v248_v31, %v249_v28  ;;  %v418_v37 = vmin.f32 %v416_v15, %v417_v29 }
  0xfe   :  { %v252_v38 = vrot.slane %v251_v35, 1 }
  0xff   :  { %v419_v45 = vrot.slane %v418_v37, 1 }
 0x100   :  { %vm253_vm2 = vcmp.lt.s32.totalorder %v251_v35, %v252_v38 }
 0x101   :  { %v254_v21 = vsel %vm253_vm2, %v251_v35, %v252_v38  ;;  %v1103_v25 = vmin.f32 %v418_v37, %v419_v45 }
 0x102   :  { %v264_v23 = vsel %vm263_vm11, %v254_v21, %v1016_v41 }
 0x103   :  { %v269_v50 = vsel %vm259_vm0, %v264_v23, %v267_v27  ;;  %vm421_vm4 = vcmp.eq.f32.partialorder %v1020_v42, %v1103_v25  ;;  %vm422_vm5 = vcmp.eq.f32.partialorder %v1023_v43, %v1103_v25  ;;  %vm423_vm6 = vcmp.eq.f32.partialorder %v1026_v44, %v1103_v25 }
 0x104   :  { %vm424_vm7 = vcmp.eq.f32.partialorder %v1029_v46, %v1103_v25  ;;  %vm425_vm8 = vcmp.eq.f32.partialorder %v1032_v47, %v1103_v25  ;;  %vm426_vm9 = vcmp.eq.f32.partialorder %v1035_v48, %v1103_v25  ;;  %vm427_vm0 = vcmp.eq.f32.partialorder %v1038_v49, %v1103_v25 }
 0x105   :  { %vm428_vm10 = vcmp.eq.f32.partialorder %v1041_v17, %v1103_v25  ;;  %v429_v62 = vsel %vm421_vm4, %v858_v52, 64  ;;  %v430_v7 = vsel %vm422_vm5, %v861_v57, 64  ;;  %v431_v3 = vsel %vm423_vm6, %v864_v59, 64 }
 0x106   :  { %v432_v39 = vsel %vm424_vm7, %v867_v60, 64  ;;  %v433_v41 = vsel %vm425_vm8, %v870_v61, 64  ;;  %v434_v42 = vsel %vm426_vm9, %v875_v63, 64  ;;  %v435_v43 = vsel %vm427_vm0, %v878_v0, 64 }
 0x107   :  { %v436_v44 = vsel %vm428_vm10, %v881_v1, 64  ;;  %vm437_vm11 = vcmp.lt.s32.totalorder %v429_v62, %v433_v41  ;;  %vm439_vm12 = vcmp.lt.s32.totalorder %v430_v7, %v434_v42  ;;  %vm441_vm14 = vcmp.lt.s32.totalorder %v431_v3, %v435_v43 }
 0x108   :  { %v438_v46 = vsel %vm437_vm11, %v429_v62, %v433_v41  ;;  %v440_v47 = vsel %vm439_vm12, %v430_v7, %v434_v42  ;;  %v442_v52 = vsel %vm441_vm14, %v431_v3, %v435_v43  ;;  %vm443_vm15 = vcmp.lt.s32.totalorder %v432_v39, %v436_v44 }
 0x109   :  { %v444_v57 = vsel %vm443_vm15, %v432_v39, %v436_v44  ;;  %vm445_vm2 = vcmp.lt.s32.totalorder %v438_v46, %v440_v47  ;;  %v467_v59 = vmin.f32 %v918_v32, %v1103_v25  ;;  %vm468_vm3 = vcmp.lt.f32.partialorder %v1103_v25, %v918_v32 }
 0x10a   :  { %v446_v60 = vsel %vm445_vm2, %v438_v46, %v440_v47  ;;  %vm447_vm4 = vcmp.lt.s32.totalorder %v442_v52, %v444_v57  ;;  %v472_v61 = vsel %vm471_vm13, %v1062_v51, %v269_v50 }
 0x10b   :  { %v448_v63 = vsel %vm447_vm4, %v442_v52, %v444_v57  ;;  %v473_v0 = vsel %vm464_vm1, %v467_v59, %v470_v36 }
 0x10c   :  { %vm449_vm5 = vcmp.lt.s32.totalorder %v446_v60, %v448_v63  ;;  %476 = vst [vmem:[#allocation3] sm:$0x1] %v473_v0 }
 0x10d   :  { %v450_v1 = vsel %vm449_vm5, %v446_v60, %v448_v63 }
 0x10e   :  { %v451_v48 = vrot.slane %v450_v1, 4 }
 0x110   :  { %vm452_vm6 = vcmp.lt.s32.totalorder %v450_v1, %v451_v48 }
 0x111   :  { %v453_v49 = vsel %vm452_vm6, %v450_v1, %v451_v48 }
 0x112   :  { %v454_v17 = vrot.slane %v453_v49, 2 }
 0x113   :  { %v484_v34 = vld [vmem:[#allocation3] sm:$0x1] }
 0x114   :  { %vm455_vm13 = vcmp.lt.s32.totalorder %v453_v49, %v454_v17  ;;  %485 = vst [vmem:[#allocation8] sm:$0x1] %v484_v34 }
 0x115   :  { %v456_v51 = vsel %vm455_vm13, %v453_v49, %v454_v17  ;;  %511 = dma.vmem_to_hbm [thread:$0]  %s507_s18, 16, %s509_s21, [#allocation9]  }
 0x116   :  { %v457_v53 = vrot.slane %v456_v51, 1  ;;  %522 = dma.vmem_to_hbm [thread:$0]  %s518_s23, 16, %s520_s26, [#allocation9]  }
 0x118   :  { %vm458_vm7 = vcmp.lt.s32.totalorder %v456_v51, %v457_v53 }
 0x119   :  { %v459_v54 = vsel %vm458_vm7, %v456_v51, %v457_v53 }
 0x11a   :  { %v463_v55 = vadd.s32 64, %v459_v54 }
 0x11c   :  { %v469_v56 = vsel %vm468_vm3, %v463_v55, %v1054_v19 }
 0x11d   :  { %v474_v58 = vsel %vm464_vm1, %v469_v56, %v472_v61 }
 0x11e   :  { %478 = vst [vmem:[#allocation5] sm:$0x1] %v474_v58 }
 0x125   :  { %v488_v4 = vld [vmem:[#allocation5] sm:$0x1] }
 0x126   :  { %489 = vst [vmem:[#allocation11] sm:$0x1] %v488_v4 }
 0x127   :  { %533 = dma.vmem_to_hbm [thread:$0]  %s529_s4, 16, %s531_s29, [#allocation12]  }
 0x128   :  { %727 = dma.done.wait [#allocation7], 16  }
 0x129   :  { %728 = vsyncadd [#allocation7], 4294967280 }
 0x12a   :  { %729 = dma.done.wait [#allocation9], 32  }
 0x12b   :  { %730 = vsyncadd [#allocation9], 4294967264 }
 0x12c   :  { %731 = dma.done.wait [#allocation12], 16  }
 0x12d   :  { %732 = vsyncadd [#allocation12], 4294967280 }
 0x12e   :  { %550 = vsyncpa [#allocation7], 1 }
 0x12f   :  { %551 = vsyncpa [#allocation9], 1 }
 0x130   :  { %552 = vsyncpa [#allocation12], 1 }

</bundles_post_ra>
